<compile_context>
chip_gen: v7x
topology: tpu7x:2x2x1
jax: 0.10.0
libtpu: 0.0.40
codegen_flags: <defaults>
</compile_context>

<pallas_src>
import functools

import jax
import jax.numpy as jnp
from jax.experimental import pallas as pl
from jax.experimental.pallas import tpu as pltpu


def _round_up(x, m):
    return (x + m - 1) // m * m


def _center_loss_kernel(labels_ref, x_ref, centers_ref, out_ref, *, feat, tf):
    k = pl.program_id(1)

    @pl.when(k == 0)
    def _():
        out_ref[...] = jnp.zeros_like(out_ref)

    x = x_ref[...]                    # (TN, TF) f32; tail rows/cols may be garbage
    labels = labels_ref[...]          # (TN, 1) int32; sentinel == nc for padded rows
    centers = centers_ref[...]        # (NC, TF) f32

    tn = x.shape[0]
    nc = centers.shape[0]

    # Class-membership mask built in-kernel (no HBM one-hot). Padded / ragged
    # rows carry an out-of-range label and therefore match no class.
    class_ids = jax.lax.broadcasted_iota(jnp.int32, (tn, nc), 1)
    mask = class_ids == labels                                     # (TN, NC)

    # Gather each sample's own center on the MXU: (TN, NC) @ (NC, TF).
    c_own = jax.lax.dot_general(
        mask.astype(jnp.float32), centers,
        dimension_numbers=(((1,), (0,)), ((), ())),
        preferred_element_type=jnp.float32)                        # (TN, TF)

    # Direct squared difference (no cancellation); mask ragged feature columns
    # of the last K tile so overhang garbage cannot contribute.
    diff = x - c_own
    col = jax.lax.broadcasted_iota(jnp.int32, (tn, tf), 1)
    d2 = jnp.where(k * tf + col < feat, diff * diff, 0.0)
    rowpart = jnp.sum(d2, axis=1, keepdims=True)                   # (TN, 1)

    # Per-class partial sums for this tile; jnp.where (not *) so NaN/Inf in
    # garbage rows cannot leak through a 0 * NaN.
    contrib = jnp.where(mask, rowpart, 0.0)                        # (TN, NC)
    partial = jnp.sum(contrib, axis=0, keepdims=True)              # (1, NC)

    # Accumulate into sublane 0 of the (8, NC) output block, which stays
    # resident across the (arbitrary) feature-tile axis.
    row_ids = jax.lax.broadcasted_iota(jnp.int32, (8, nc), 0)
    out_ref[...] += jnp.where(row_ids == 0, partial, 0.0)


def _vmem_footprint(tn, tf, nc, k_tiles):
    f32 = 4
    nc8 = _round_up(nc, 8)
    ncl = _round_up(nc, 128)
    x_bufs = 2 * tn * tf * f32                       # double-buffered x tile
    lbl_bufs = 2 * tn * 128 * f32                    # (TN, 1) int32, lane-padded
    cen_bufs = (1 if k_tiles == 1 else 2) * nc8 * tf * f32
    out_bufs = 2 * 8 * ncl * f32
    # Rough allowance for in-kernel temporaries (c_own, diff/d2, mask, contrib).
    temps = 2 * tn * tf * f32 + 2 * tn * ncl * f32 + tn * 128 * f32
    return x_bufs + lbl_bufs + cen_bufs + out_bufs + temps


def _pick_tiles(n, feat, nc, budget):
    # MXU-aligned row tiles, 128..1024 (budget never degrades TN to 8).
    tn_cap = min(1024, max(256, _round_up(max(n, 1), 256)))
    tn_opts = [t for t in (1024, 512, 256, 128) if t <= tn_cap] or [128]
    # Feature tiles: full F first (single resident K step), else 128-multiples.
    tf_opts = [feat] + [t for t in (8192, 4096, 2048, 1024, 512, 256, 128)
                        if t < feat]

    tn, tf = 128, min(feat, 128)      # last-resort fallback
    found = False
    for cand_tn in tn_opts:
        for cand_tf in tf_opts:
            k_tiles = -(-feat // cand_tf)
            if _vmem_footprint(cand_tn, cand_tf, nc, k_tiles) <= budget:
                tn, tf = cand_tn, cand_tf
                found = True
                break
        if found:
            break

    if n <= tn:
        # Tiny batch: use a single exact N block (block == full dim) when the
        # feature axis is untiled, otherwise the smallest sublane-aligned tile.
        tn = n if tf >= feat else max(8, _round_up(n, 8))
    return tn, tf


def center_loss(x, labels, centers, num_classes):
    n = x.shape[0]
    # 'n c h w -> n (c h) w' followed by a full-tensor Frobenius norm is
    # equivalent to a flat per-sample feature vector, so flatten features.
    x_flat = x.reshape(n, -1).astype(jnp.float32)
    feat = x_flat.shape[1]
    centers_flat = centers.reshape(num_classes, -1).astype(jnp.float32)
    assert centers_flat.shape[1] == feat

    # Generation-aware VMEM budget (~64 MiB scoped on 128 MiB parts, ~48 MiB on
    # v7x's 64 MiB parts); conservative fallback if the query is unavailable.
    try:
        vmem_cap = int(pltpu.get_tpu_info().vmem_capacity_bytes)
    except Exception:
        vmem_cap = 64 * 1024 * 1024
    budget = min(64 * 1024 * 1024, (vmem_cap * 3) // 4)

    tn, tf = _pick_tiles(n, feat, num_classes, budget)
    num_n = -(-n // tn)
    num_k = -(-feat // tf)

    # Tiny padded label column; sentinel (== num_classes) kills ragged rows of
    # the last N tile, so x itself is never copied or padded host-side.
    labels_col = jnp.full((num_n * tn, 1), num_classes, dtype=jnp.int32)
    labels_col = labels_col.at[:n, 0].set(labels.astype(jnp.int32))

    kernel = functools.partial(_center_loss_kernel, feat=feat, tf=tf)
    footprint = _vmem_footprint(tn, tf, num_classes, num_k)
    vmem_limit = int(min(budget, max(2 * footprint, 32 * 1024 * 1024)))

    def build(single_buffer_centers):
        centers_kwargs = {}
        if single_buffer_centers and num_k == 1:
            # Constant index_map -> the second pipeline buffer is pure waste.
            centers_kwargs = dict(pipeline_mode=pl.Buffered(1))
        return pl.pallas_call(
            kernel,
            out_shape=jax.ShapeDtypeStruct((num_n * 8, num_classes), jnp.float32),
            grid_spec=pltpu.PrefetchScalarGridSpec(
                num_scalar_prefetch=0,
                grid=(num_n, num_k),
                in_specs=[
                    pl.BlockSpec((tn, 1), lambda i, k: (i, 0)),           # labels
                    pl.BlockSpec((tn, tf), lambda i, k: (i, k)),          # x
                    pl.BlockSpec((num_classes, tf), lambda i, k: (0, k),  # centers
                                 **centers_kwargs),
                ],
                out_specs=pl.BlockSpec((8, num_classes), lambda i, k: (i, 0)),
            ),
            compiler_params=pltpu.CompilerParams(
                dimension_semantics=("parallel", "arbitrary"),
                vmem_limit_bytes=vmem_limit),
        )

    try:
        partials = build(True)(labels_col, x_flat, centers_flat)
    except Exception:
        # Fall back to default double-buffering if Buffered(1) is unsupported.
        partials = build(False)(labels_col, x_flat, centers_flat)

    # Tiny epilogue: per-class sums across tiles are exact sums of squares
    # (no cancellation), so sqrt directly, then mean over classes.
    per_class_sq = jnp.sum(partials, axis=0)
    return jnp.sum(jnp.sqrt(per_class_sq)) / num_classes


if __name__ == "__main__":
    key = jax.random.PRNGKey(0)
    kx, kl, kc = jax.random.split(key, 3)

    num_classes = 4
    N, C, H, W = 2, 4, 16, 16

    x = jax.random.normal(kx, (N, C, H, W), dtype=jnp.float32)
    labels = jax.random.randint(kl, (N,), 0, num_classes)
    # centers shape implied by the forward: (num_classes, C*H, W)
    centers = jax.random.normal(kc, (num_classes, C * H, W), dtype=jnp.float32)

    loss = center_loss(x, labels, centers, num_classes)
    loss = jax.block_until_ready(loss)

    # plain-JAX reference with identical semantics
    xf = x.reshape(N, -1)
    cf = centers.reshape(num_classes, -1)
    ref = 0.0
    for ci in range(num_classes):
        m = (labels == ci)[:, None]
        sq = jnp.sum(jnp.where(m, (xf - cf[ci][None, :]) ** 2, 0.0))
        ref = ref + jnp.sqrt(sq)
    ref = ref / num_classes

    assert jnp.allclose(loss, ref, rtol=1e-4, atol=1e-4), (loss, ref)
    print("KERNEL_OK")
</pallas_src>

<mosaic_0001>
module attributes {stable_mosaic.version = 11 : i64} {
  func.func @_center_loss_kernel(%arg0: i32, %arg1: i32, %arg2: memref<2x1xi32, #tpu.memory_space<vmem>>, %arg3: memref<2x1024xf32, #tpu.memory_space<vmem>>, %arg4: memref<4x1024xf32, #tpu.memory_space<vmem>>, %arg5: memref<8x4xf32, #tpu.memory_space<vmem>>) attributes {dimension_semantics = [#tpu.dimension_semantics<parallel>, #tpu.dimension_semantics<arbitrary>], iteration_bounds = array<i64: 1, 1>, scalar_prefetch = 0 : i64, scratch_operands = 0 : i64, tpu.core_type = #tpu.core_type<tc>, window_params = [{transform_indices = @transform_0, window_bounds = array<i64: 2, 1>}, {transform_indices = @transform_1, window_bounds = array<i64: 2, 1024>}, {pipeline_mode = #tpu.pipeline_mode<synchronous>, transform_indices = @transform_2, window_bounds = array<i64: 4, 1024>}, {transform_indices = @transform_3, window_bounds = array<i64: 8, 4>}]} {
    %c0_i32 = arith.constant 0 : i32
    %0 = arith.cmpi eq, %arg1, %c0_i32 : i32
    %1 = arith.extui %0 : i1 to i32
    %c0_i32_0 = arith.constant 0 : i32
    %2 = arith.cmpi ne, %1, %c0_i32_0 : i32
    scf.if %2 {
      %cst_17 = arith.constant 0.000000e+00 : f32
      %40 = vector.broadcast %cst_17 : f32 to vector<8x4xf32>
      %c0_18 = arith.constant 0 : index
      %c0_19 = arith.constant 0 : index
      %41 = vector.load %arg5[%c0_18, %c0_19] : memref<8x4xf32, #tpu.memory_space<vmem>>, vector<8x4xf32>
      tpu.vector_store %arg5[%c0_18, %c0_19], %40 {strides = array<i32>} : memref<8x4xf32, #tpu.memory_space<vmem>>, vector<8x4xf32>,
    } else {
    }
    %c0 = arith.constant 0 : index
    %c0_1 = arith.constant 0 : index
    %3 = vector.load %arg3[%c0, %c0_1] : memref<2x1024xf32, #tpu.memory_space<vmem>>, vector<2x1024xf32>
    %c0_2 = arith.constant 0 : index
    %c0_3 = arith.constant 0 : index
    %4 = vector.load %arg2[%c0_2, %c0_3] : memref<2x1xi32, #tpu.memory_space<vmem>>, vector<2x1xi32>
    %c0_4 = arith.constant 0 : index
    %c0_5 = arith.constant 0 : index
    %5 = vector.load %arg4[%c0_4, %c0_5] : memref<4x1024xf32, #tpu.memory_space<vmem>>, vector<4x1024xf32>
    %6 = tpu.iota {dimensions = array<i32: 1>} : vector<2x4xi32>
    %7 = vector.broadcast %4 : vector<2x1xi32> to vector<2x4xi32>
    %8 = arith.cmpi eq, %6, %7 : vector<2x4xi32>
    %9 = arith.extui %8 : vector<2x4xi1> to vector<2x4xi32>
    %10 = arith.sitofp %9 : vector<2x4xi32> to vector<2x4xf32>
    %cst = arith.constant dense<0.000000e+00> : vector<2x1024xf32>
    %11 = tpu.matmul %10, %5, %cst {dimension_numbers = #tpu.dot_dimension_numbers<[1], [0], [0], [1], [0, 0, 1, 1], [], []>} : vector<2x4xf32>, vector<4x1024xf32>, vector<2x1024xf32> -> vector<2x1024xf32>
    %12 = arith.subf %3, %11 : vector<2x1024xf32>
    %13 = tpu.iota {dimensions = array<i32: 1>} : vector<2x1024xi32>
    %c1024_i32 = arith.constant 1024 : i32
    %14 = arith.muli %arg1, %c1024_i32 : i32
    %15 = vector.broadcast %14 : i32 to vector<2x1024xi32>
    %16 = arith.addi %15, %13 : vector<2x1024xi32>
    %c1024_i32_6 = arith.constant 1024 : i32
    %17 = vector.broadcast %c1024_i32_6 : i32 to vector<2x1024xi32>
    %18 = arith.cmpi slt, %16, %17 : vector<2x1024xi32>
    %19 = arith.mulf %12, %12 : vector<2x1024xf32>
    %cst_7 = arith.constant 0.000000e+00 : f32
    %20 = vector.broadcast %cst_7 : f32 to vector<2x1024xf32>
    %21 = arith.select %18, %19, %20 : vector<2x1024xi1>, vector<2x1024xf32>
    %cst_8 = arith.constant dense<0.000000e+00> : vector<2xf32>
    %22 = vector.multi_reduction <add>, %21, %cst_8 [1] : vector<2x1024xf32> to vector<2xf32>
    %23 = vector.shape_cast %22 : vector<2xf32> to vector<2x1xf32>
    %cst_9 = arith.constant 0.000000e+00 : f32
    %24 = vector.shape_cast %23 : vector<2x1xf32> to vector<2x1xf32>
    %25 = vector.broadcast %24 : vector<2x1xf32> to vector<2x4xf32>
    %26 = vector.broadcast %cst_9 : f32 to vector<2x4xf32>
    %27 = arith.select %8, %25, %26 : vector<2x4xi1>, vector<2x4xf32>
    %cst_10 = arith.constant dense<0.000000e+00> : vector<4xf32>
    %28 = vector.multi_reduction <add>, %27, %cst_10 [0] : vector<2x4xf32> to vector<4xf32>
    %29 = vector.shape_cast %28 : vector<4xf32> to vector<1x4xf32>
    %30 = tpu.iota {dimensions = array<i32: 0>} : vector<8x4xi32>
    %c0_11 = arith.constant 0 : index
    %c0_12 = arith.constant 0 : index
    %31 = vector.load %arg5[%c0_11, %c0_12] : memref<8x4xf32, #tpu.memory_space<vmem>>, vector<8x4xf32>
    %c0_i32_13 = arith.constant 0 : i32
    %32 = vector.broadcast %c0_i32_13 : i32 to vector<8x4xi32>
    %33 = arith.cmpi eq, %30, %32 : vector<8x4xi32>
    %cst_14 = arith.constant 0.000000e+00 : f32
    %34 = vector.shape_cast %29 : vector<1x4xf32> to vector<1x4xf32>
    %35 = vector.broadcast %34 : vector<1x4xf32> to vector<8x4xf32>
    %36 = vector.broadcast %cst_14 : f32 to vector<8x4xf32>
    %37 = arith.select %33, %35, %36 : vector<8x4xi1>, vector<8x4xf32>
    %38 = arith.addf %31, %37 : vector<8x4xf32>
    %c0_15 = arith.constant 0 : index
    %c0_16 = arith.constant 0 : index
    %39 = vector.load %arg5[%c0_15, %c0_16] : memref<8x4xf32, #tpu.memory_space<vmem>>, vector<8x4xf32>
    tpu.vector_store %arg5[%c0_15, %c0_16], %38 {strides = array<i32>} : memref<8x4xf32, #tpu.memory_space<vmem>>, vector<8x4xf32>,
    return
  }
  func.func @transform_0(%arg0: i32, %arg1: i32) -> (i32, i32) {
    %c0_i32 = arith.constant 0 : i32
    %c0_i32_0 = arith.constant 0 : i32
    return %arg0, %c0_i32 : i32, i32
  }
  func.func @transform_1(%arg0: i32, %arg1: i32) -> (i32, i32) {
    %c0_i32 = arith.constant 0 : i32
    return %arg0, %arg1 : i32, i32
  }
  func.func @transform_2(%arg0: i32, %arg1: i32) -> (i32, i32) {
    %c0_i32 = arith.constant 0 : i32
    %c0_i32_0 = arith.constant 0 : i32
    return %c0_i32, %arg1 : i32, i32
  }
  func.func @transform_3(%arg0: i32, %arg1: i32) -> (i32, i32) {
    %c0_i32 = arith.constant 0 : i32
    %c0_i32_0 = arith.constant 0 : i32
    return %arg0, %c0_i32 : i32, i32
  }
}

module attributes {stable_mosaic.version = 11 : i64} {
  func.func @_center_loss_kernel(%arg0: i32, %arg1: i32, %arg2: memref<2x1xi32, #tpu.memory_space<vmem>>, %arg3: memref<2x1024xf32, #tpu.memory_space<vmem>>, %arg4: memref<4x1024xf32, #tpu.memory_space<vmem>>, %arg5: memref<8x4xf32, #tpu.memory_space<vmem>>) attributes {dimension_semantics = [#tpu.dimension_semantics<parallel>, #tpu.dimension_semantics<arbitrary>], iteration_bounds = array<i64: 1, 1>, scalar_prefetch = 0 : i64, scratch_operands = 0 : i64, tpu.core_type = #tpu.core_type<tc>, window_params = [{transform_indices = @transform_0, window_bounds = array<i64: 2, 1>}, {transform_indices = @transform_1, window_bounds = array<i64: 2, 1024>}, {transform_indices = @transform_2, window_bounds = array<i64: 4, 1024>}, {transform_indices = @transform_3, window_bounds = array<i64: 8, 4>}]} {
    %c0_i32 = arith.constant 0 : i32
    %0 = arith.cmpi eq, %arg1, %c0_i32 : i32
    %1 = arith.extui %0 : i1 to i32
    %c0_i32_0 = arith.constant 0 : i32
    %2 = arith.cmpi ne, %1, %c0_i32_0 : i32
    scf.if %2 {
      %cst_17 = arith.constant 0.000000e+00 : f32
      %40 = vector.broadcast %cst_17 : f32 to vector<8x4xf32>
      %c0_18 = arith.constant 0 : index
      %c0_19 = arith.constant 0 : index
      %41 = vector.load %arg5[%c0_18, %c0_19] : memref<8x4xf32, #tpu.memory_space<vmem>>, vector<8x4xf32>
      tpu.vector_store %arg5[%c0_18, %c0_19], %40 {strides = array<i32>} : memref<8x4xf32, #tpu.memory_space<vmem>>, vector<8x4xf32>,
    } else {
    }
    %c0 = arith.constant 0 : index
    %c0_1 = arith.constant 0 : index
    %3 = vector.load %arg3[%c0, %c0_1] : memref<2x1024xf32, #tpu.memory_space<vmem>>, vector<2x1024xf32>
    %c0_2 = arith.constant 0 : index
    %c0_3 = arith.constant 0 : index
    %4 = vector.load %arg2[%c0_2, %c0_3] : memref<2x1xi32, #tpu.memory_space<vmem>>, vector<2x1xi32>
    %c0_4 = arith.constant 0 : index
    %c0_5 = arith.constant 0 : index
    %5 = vector.load %arg4[%c0_4, %c0_5] : memref<4x1024xf32, #tpu.memory_space<vmem>>, vector<4x1024xf32>
    %6 = tpu.iota {dimensions = array<i32: 1>} : vector<2x4xi32>
    %7 = vector.broadcast %4 : vector<2x1xi32> to vector<2x4xi32>
    %8 = arith.cmpi eq, %6, %7 : vector<2x4xi32>
    %9 = arith.extui %8 : vector<2x4xi1> to vector<2x4xi32>
    %10 = arith.sitofp %9 : vector<2x4xi32> to vector<2x4xf32>
    %cst = arith.constant dense<0.000000e+00> : vector<2x1024xf32>
    %11 = tpu.matmul %10, %5, %cst {dimension_numbers = #tpu.dot_dimension_numbers<[1], [0], [0], [1], [0, 0, 1, 1], [], []>} : vector<2x4xf32>, vector<4x1024xf32>, vector<2x1024xf32> -> vector<2x1024xf32>
    %12 = arith.subf %3, %11 : vector<2x1024xf32>
    %13 = tpu.iota {dimensions = array<i32: 1>} : vector<2x1024xi32>
    %c1024_i32 = arith.constant 1024 : i32
    %14 = arith.muli %arg1, %c1024_i32 : i32
    %15 = vector.broadcast %14 : i32 to vector<2x1024xi32>
    %16 = arith.addi %15, %13 : vector<2x1024xi32>
    %c1024_i32_6 = arith.constant 1024 : i32
    %17 = vector.broadcast %c1024_i32_6 : i32 to vector<2x1024xi32>
    %18 = arith.cmpi slt, %16, %17 : vector<2x1024xi32>
    %19 = arith.mulf %12, %12 : vector<2x1024xf32>
    %cst_7 = arith.constant 0.000000e+00 : f32
    %20 = vector.broadcast %cst_7 : f32 to vector<2x1024xf32>
    %21 = arith.select %18, %19, %20 : vector<2x1024xi1>, vector<2x1024xf32>
    %cst_8 = arith.constant dense<0.000000e+00> : vector<2xf32>
    %22 = vector.multi_reduction <add>, %21, %cst_8 [1] : vector<2x1024xf32> to vector<2xf32>
    %23 = vector.shape_cast %22 : vector<2xf32> to vector<2x1xf32>
    %cst_9 = arith.constant 0.000000e+00 : f32
    %24 = vector.shape_cast %23 : vector<2x1xf32> to vector<2x1xf32>
    %25 = vector.broadcast %24 : vector<2x1xf32> to vector<2x4xf32>
    %26 = vector.broadcast %cst_9 : f32 to vector<2x4xf32>
    %27 = arith.select %8, %25, %26 : vector<2x4xi1>, vector<2x4xf32>
    %cst_10 = arith.constant dense<0.000000e+00> : vector<4xf32>
    %28 = vector.multi_reduction <add>, %27, %cst_10 [0] : vector<2x4xf32> to vector<4xf32>
    %29 = vector.shape_cast %28 : vector<4xf32> to vector<1x4xf32>
    %30 = tpu.iota {dimensions = array<i32: 0>} : vector<8x4xi32>
    %c0_11 = arith.constant 0 : index
    %c0_12 = arith.constant 0 : index
    %31 = vector.load %arg5[%c0_11, %c0_12] : memref<8x4xf32, #tpu.memory_space<vmem>>, vector<8x4xf32>
    %c0_i32_13 = arith.constant 0 : i32
    %32 = vector.broadcast %c0_i32_13 : i32 to vector<8x4xi32>
    %33 = arith.cmpi eq, %30, %32 : vector<8x4xi32>
    %cst_14 = arith.constant 0.000000e+00 : f32
    %34 = vector.shape_cast %29 : vector<1x4xf32> to vector<1x4xf32>
    %35 = vector.broadcast %34 : vector<1x4xf32> to vector<8x4xf32>
    %36 = vector.broadcast %cst_14 : f32 to vector<8x4xf32>
    %37 = arith.select %33, %35, %36 : vector<8x4xi1>, vector<8x4xf32>
    %38 = arith.addf %31, %37 : vector<8x4xf32>
    %c0_15 = arith.constant 0 : index
    %c0_16 = arith.constant 0 : index
    %39 = vector.load %arg5[%c0_15, %c0_16] : memref<8x4xf32, #tpu.memory_space<vmem>>, vector<8x4xf32>
    tpu.vector_store %arg5[%c0_15, %c0_16], %38 {strides = array<i32>} : memref<8x4xf32, #tpu.memory_space<vmem>>, vector<8x4xf32>,
    return
  }
  func.func @transform_0(%arg0: i32, %arg1: i32) -> (i32, i32) {
    %c0_i32 = arith.constant 0 : i32
    %c0_i32_0 = arith.constant 0 : i32
    return %arg0, %c0_i32 : i32, i32
  }
  func.func @transform_1(%arg0: i32, %arg1: i32) -> (i32, i32) {
    %c0_i32 = arith.constant 0 : i32
    return %arg0, %arg1 : i32, i32
  }
  func.func @transform_2(%arg0: i32, %arg1: i32) -> (i32, i32) {
    %c0_i32 = arith.constant 0 : i32
    %c0_i32_0 = arith.constant 0 : i32
    return %c0_i32, %arg1 : i32, i32
  }
  func.func @transform_3(%arg0: i32, %arg1: i32) -> (i32, i32) {
    %c0_i32 = arith.constant 0 : i32
    %c0_i32_0 = arith.constant 0 : i32
    return %arg0, %c0_i32 : i32, i32
  }
}

</mosaic_0001>

<bundles_post_ra>
// kernel: tpu_custom_call.1
= control target key start
LH: loop header
LB: loop body
LE: loop exit
PB: predicated region body
PF: predicated region fallthrough
CT: control target
= control target key end

     0   :  { %8 = vsyncpa [#allocation3], 0  ;;  %s707_s0 = inlined_call_operand.vmem [shape: s32[2,1], index: 0, kind: input, shape index: {}]   ;;  %s708_s1 = inlined_call_operand.hbm [shape: f32[2,1024], index: 1, kind: input, shape index: {}]   ;;  %s709_s2 = inlined_call_operand.hbm [shape: f32[4,1024], index: 2, kind: input, shape index: {}]   ;;  %s710_s3 = inlined_call_operand.vmem [shape: f32[8,4], index: 3, kind: output, shape index: {}]  }
   0x1   :  { %9 = vsyncpa [#allocation5], 0  ;;  %s608_s12 = smov [#allocation2]   ;;  %s609_s14 = smov [#allocation4]  }
   0x2   :  { %s18_s13 = sshll.u32 %s608_s12, 4  ;;  %s28_s15 = sshll.u32 %s609_s14, 4  ;;  %s19_s13 = int_to_ptr.vmem [resolvable:$true] %s18_s13  ;;  %s29_s15 = int_to_ptr.vmem [resolvable:$true] %s28_s15 }
   0x3   :  { %s560_s18 = scalar_lea.hbm %s708_s1, 256 }
   0x4   :  { %p561_p0 = scmp.ne.s32.totalorder %s708_s1, %s560_s18  ;;  %p564_p1 = scmp.lt.u32.totalorder %s560_s18, %s708_s1 }
   0x6   :  { %p566_p2 = pnand %p564_p1, %p561_p0 }
   0x8   :  { %569 = shalt.err (!%p566_p2)
}
   0x9   :  { %s570_s23 = scalar_lea.vmem %s19_s13, 256  ;;  %p575_p4 = scmp.lt.s32.totalorder %s19_s13, %s19_s13 }
   0xa   :  { %p571_p3 = scmp.ne.s32.totalorder %s19_s13, %s570_s23  ;;  %p576_p5 = scmp.lt.s32.totalorder %s570_s23, %s570_s23 }
   0xc   :  { %p577_p6 = por %p576_p5, %p575_p4 }
   0xe   :  { %p578_p7 = pnand %p577_p6, %p571_p3 }
  0x10   :  { %581 = shalt.err (!%p578_p7)
}
  0x11   :  { %21 = dma.hbm_to_vmem [thread:$0]  %s708_s1, 256, %s19_s13, [#allocation3]  }
  0x12   :  { %s582_s28 = scalar_lea.hbm %s709_s2, 512 }
  0x13   :  { %p583_p8 = scmp.ne.s32.totalorder %s709_s2, %s582_s28  ;;  %p586_p9 = scmp.lt.u32.totalorder %s582_s28, %s709_s2 }
  0x15   :  { %p588_p10 = pnand %p586_p9, %p583_p8 }
  0x17   :  { %591 = shalt.err (!%p588_p10)
}
  0x18   :  { %s592_s6 = scalar_lea.vmem %s29_s15, 512  ;;  %p597_p12 = scmp.lt.s32.totalorder %s29_s15, %s29_s15 }
  0x19   :  { %p593_p11 = scmp.ne.s32.totalorder %s29_s15, %s592_s6  ;;  %p598_p13 = scmp.lt.s32.totalorder %s592_s6, %s592_s6 }
  0x1b   :  { %p599_p0 = por %p598_p13, %p597_p12 }
  0x1d   :  { %p600_p1 = pnand %p599_p0, %p593_p11 }
  0x1f   :  { %603 = shalt.err (!%p600_p1)
}
  0x20   :  { %31 = dma.hbm_to_vmem [thread:$0]  %s709_s2, 512, %s29_s15, [#allocation5]  }
  0x21   :  { %604 = dma.done.wait [#allocation3], 256  }
  0x22   :  { %605 = vsyncadd [#allocation3], 4294967040 }
  0x23   :  { %606 = dma.done.wait [#allocation5], 512  }
  0x24   :  { %607 = vsyncadd [#allocation5], 4294966784  ;;  %v610_v0 = vmov 0   ;;  %v611_v1 = vmov 0.0   ;;  %v46_v2 = vld [vmem:[%s707_s0] sm:$0x3]  ;;  %v51_v11 = vlaneseq }
  0x25   :  { %555 = vset.pattern.permute.xlu0 %v610_v0  ;;  %152 = vmatprep.mubr.f32.mxu0 %v611_v1  ;;  %v47_v3 = vld [vmem:[#allocation4] sm:$0xff]  ;;  %vm71_vm0 = vcmask 1043456   ;;  %v48_v4 = vld [vmem:[#allocation4 + $0x8] sm:$0xff]  ;;  %vm42_vm1 = vcmask 31744   ;;  %v49_v7 = vld [vmem:[#allocation4 + $0x10] sm:$0xff]  ;;  %vm497_vm3 = vcmask 1041408  }
  0x26   :  { %223 = vmatprep.mubr.f32.mxu1 %v611_v1  ;;  %54 = vperm.xlu0 %555, %v46_v2   ;;  %v63_v5 = vcombine.high %v47_v3, %v47_v3  ;;  %v64_v6 = vcombine.high %v48_v4, %v48_v4  ;;  %v50_v8 = vld [vmem:[#allocation4 + $0x18] sm:$0xff]  ;;  %43 = vst.msk [vmem:[%s710_s3] sm:$0xff] %vm42_vm1, %v611_v1  ;;  %v670_v12 = vand.u32 127, %v51_v11  ;;  %v612_v15 = vmov 1983009808   ;;  %v44_v30 = vld [vmem:[#allocation2] sm:$0xff] }
  0x27   :  { %v65_v9 = vcombine.high %v49_v7, %v49_v7  ;;  %v66_v10 = vcombine.high %v50_v8, %v50_v8  ;;  %v383_v16 = vunpack.c.l.s4 %v612_v15  ;;  %v685_v18 = vshrl.u32 %v51_v11, 7  ;;  %v45_v39 = vld [vmem:[#allocation2 + $0x8] sm:$0xff] }
  0x28   :  { %538 = vmatprep.subr.msk.mxu0 %vm71_vm0, %v63_v5  ;;  %541 = vmatprep.subr.msk.mxu1 %vm71_vm0, %v64_v6  ;;  %vm516_vm4 = vcmask 25600  }
  0x29   :  { %539 = vmatpush1.msk.msra.mxu0 %vm71_vm0, %v47_v3  ;;  %542 = vmatpush1.msk.msra.mxu1 %vm71_vm0, %v48_v4  ;;  %v384_v17 = vunpack.c.0.s8 %v383_v16  ;;  %vm527_vm5 = vcmp.eq.s32.totalorder %v685_v18, 0 }
  0x2a   :  { %544 = vmatprep.subr.msk.mxu0 %vm71_vm0, %v65_v9  ;;  %547 = vmatprep.subr.msk.mxu1 %vm71_vm0, %v66_v10 }
  0x2b   :  { %v387_v19 = vsub.s32 %v384_v17, %v685_v18 }
  0x2d   :  { %v526_v16 = vld [vmem:[%s710_s3] sm:$0xff] }
  0xa5   :  { %v672_v13 = vpop.permute.xlu0 %54 }
  0xa6   :  { %vm56_vm2 = vcmp.eq.s32.totalorder %v670_v12, %v672_v13 }
  0xa7   :  { %v537_v14 = vsel %vm56_vm2, 1.0, %v611_v1 }
  0xa8   :  { %540 = vmatmul.mubr.msk.f32.vlgmr.msra.gmra.mrb[0].mxu0 %vm42_vm1, %v537_v14  ;;  %543 = vmatmul.mubr.msk.f32.vlgmr.msra.gmra.mrb[0].mxu1 %vm42_vm1, %v537_v14 }
  0xa9   :  { %545 = vmatpush1.msk.msra.mxu0 %vm71_vm0, %v49_v7  ;;  %294 = vmatprep.mubr.f32.mxu0 %v611_v1 }
  0xaa   :  { %548 = vmatpush1.msk.msra.mxu1 %vm71_vm0, %v50_v8  ;;  %365 = vmatprep.mubr.f32.mxu1 %v611_v1 }
  0xac   :  { %546 = vmatmul.mubr.msk.f32.vlgmr.msra.gmra.mrb[2].mxu0 %vm42_vm1, %v537_v14  ;;  %549 = vmatmul.mubr.msk.f32.vlgmr.msra.gmra.mrb[2].mxu1 %vm42_vm1, %v537_v14 }
 0x17b   :  { %v154_v20 = vpop.f32.mrb[0].mxu0  ;;  %v225_v21 = vpop.f32.mrb[0].mxu1 }
 0x17c   :  { %v156_v22 = vpop.f32.mrb[1].mxu0  ;;  %v227_v23 = vpop.f32.mrb[1].mxu1 }
 0x17d   :  { %v380_v24 = vcombine.low %v154_v20, %v156_v22  ;;  %v381_v25 = vcombine.low %v225_v21, %v227_v23 }
 0x17f   :  { %v388_v26 = vrot.slane %v380_v24, %v387_v19  ;;  %v395_v27 = vrot.slane %v381_v25, %v387_v19  ;;  %v296_v28 = vpop.f32.mrb[2].mxu0  ;;  %v367_v29 = vpop.f32.mrb[2].mxu1 }
 0x180   :  { %v298_v31 = vpop.f32.mrb[3].mxu0  ;;  %v369_v32 = vpop.f32.mrb[3].mxu1 }
 0x181   :  { %v396_v33 = vcombine.low %v388_v26, %v395_v27  ;;  %v397_v34 = vcombine.low %v296_v28, %v298_v31  ;;  %v398_v35 = vcombine.low %v367_v29, %v369_v32 }
 0x183   :  { %v416_v36 = vsub.f32 %v44_v30, %v396_v33  ;;  %v405_v37 = vrot.slane %v397_v34, %v387_v19  ;;  %v412_v38 = vrot.slane %v398_v35, %v387_v19 }
 0x185   :  { %v443_v40 = vmul.f32 %v416_v36, %v416_v36  ;;  %v413_v41 = vcombine.low %v405_v37, %v412_v38 }
 0x187   :  { %v447_v42 = vcombine.high %v443_v40, %v443_v40  ;;  %v454_v43 = vrot.slane %v443_v40, %v387_v19  ;;  %v417_v44 = vsub.f32 %v45_v39, %v413_v41 }
 0x189   :  { %v461_v45 = vrot.slane %v447_v42, %v387_v19  ;;  %v462_v46 = vcombine.high %v454_v43, %v454_v43  ;;  %v444_v47 = vmul.f32 %v417_v44, %v417_v44  ;;  %v498_v48 = vsel %vm497_vm3, %v454_v43, 0.0 }
 0x18b   :  { %v499_v49 = vsel %vm497_vm3, %v462_v46, 0.0  ;;  %v471_v50 = vrot.slane %v444_v47, %v387_v19  ;;  %v463_v51 = vcombine.high %v461_v45, %v461_v45  ;;  %v464_v52 = vcombine.high %v444_v47, %v444_v47 }
 0x18c   :  { %v500_v53 = vadd.f32 %v499_v49, %v498_v48  ;;  %v501_v55 = vsel %vm497_vm3, %v461_v45, 0.0 }
 0x18d   :  { %v478_v54 = vrot.slane %v464_v52, %v387_v19  ;;  %v479_v57 = vcombine.high %v471_v50, %v471_v50  ;;  %v503_v58 = vsel %vm497_vm3, %v463_v51, 0.0  ;;  %v505_v60 = vsel %vm497_vm3, %v471_v50, 0.0 }
 0x18e   :  { %v502_v56 = vadd.f32 %v501_v55, %v500_v53 }
 0x18f   :  { %v480_v62 = vcombine.high %v478_v54, %v478_v54  ;;  %v507_v63 = vsel %vm497_vm3, %v479_v57, 0.0  ;;  %v509_v1 = vsel %vm497_vm3, %v478_v54, 0.0 }
 0x190   :  { %v504_v59 = vadd.f32 %v503_v58, %v502_v56 }
 0x191   :  { %v511_v3 = vsel %vm497_vm3, %v480_v62, 0.0 }
 0x192   :  { %v506_v61 = vadd.f32 %v505_v60, %v504_v59 }
 0x194   :  { %v508_v0 = vadd.f32 %v507_v63, %v506_v61 }
 0x196   :  { %v510_v2 = vadd.f32 %v509_v1, %v508_v0 }
 0x198   :  { %v512_v4 = vadd.f32 %v511_v3, %v510_v2 }
 0x19a   :  { %513 = vadd.xlane.f32.xlu0 %v512_v4 }
 0x227   :  { %v514_v5 = vpop.xlane.xlu0 %513 }
 0x228   :  { %v515_v6 = vsel %vm56_vm2, %v514_v5, 0.0 }
 0x229   :  { %v517_v7 = vsel %vm516_vm4, %v515_v6, 0.0 }
 0x22a   :  { %v518_v8 = vrot.slane %v517_v7, 4 }
 0x22c   :  { %v519_v9 = vadd.f32 %v518_v8, %v517_v7 }
 0x22e   :  { %v520_v10 = vrot.slane %v519_v9, 2 }
 0x230   :  { %v521_v11 = vadd.f32 %v520_v10, %v519_v9 }
 0x232   :  { %v522_v14 = vrot.slane %v521_v11, 1 }
 0x234   :  { %v523_v15 = vadd.f32 %v522_v14, %v521_v11 }
 0x236   :  { %v528_v17 = vsel %vm527_vm5, %v523_v15, 0.0 }
 0x237   :  { %v529_v19 = vadd.f32 %v528_v17, %v526_v16 }
 0x239   :  { %530 = vst.msk [vmem:[%s710_s3] sm:$0xff] %vm42_vm1, %v529_v19 }
 0x23a   :  { %535 = vsyncpa [#allocation3], 1 }
 0x23b   :  { %536 = vsyncpa [#allocation5], 1 }

// kernel: tpu_custom_call.1
= control target key start
LH: loop header
LB: loop body
LE: loop exit
PB: predicated region body
PF: predicated region fallthrough
CT: control target
= control target key end

     0   :  { %8 = vsyncpa [#allocation3], 0  ;;  %s707_s0 = inlined_call_operand.vmem [shape: s32[2,1], index: 0, kind: input, shape index: {}]   ;;  %s708_s1 = inlined_call_operand.hbm [shape: f32[2,1024], index: 1, kind: input, shape index: {}]   ;;  %s709_s2 = inlined_call_operand.hbm [shape: f32[4,1024], index: 2, kind: input, shape index: {}]   ;;  %s710_s3 = inlined_call_operand.vmem [shape: f32[8,4], index: 3, kind: output, shape index: {}]  }
   0x1   :  { %9 = vsyncpa [#allocation5], 0  ;;  %s608_s12 = smov [#allocation2]   ;;  %s609_s14 = smov [#allocation4]  }
   0x2   :  { %s18_s13 = sshll.u32 %s608_s12, 4  ;;  %s28_s15 = sshll.u32 %s609_s14, 4  ;;  %s19_s13 = int_to_ptr.vmem [resolvable:$true] %s18_s13  ;;  %s29_s15 = int_to_ptr.vmem [resolvable:$true] %s28_s15 }
   0x3   :  { %s560_s18 = scalar_lea.hbm %s708_s1, 256 }
   0x4   :  { %p561_p0 = scmp.ne.s32.totalorder %s708_s1, %s560_s18  ;;  %p564_p1 = scmp.lt.u32.totalorder %s560_s18, %s708_s1 }
   0x6   :  { %p566_p2 = pnand %p564_p1, %p561_p0 }
   0x8   :  { %569 = shalt.err (!%p566_p2)
}
   0x9   :  { %s570_s23 = scalar_lea.vmem %s19_s13, 256  ;;  %p575_p4 = scmp.lt.s32.totalorder %s19_s13, %s19_s13 }
   0xa   :  { %p571_p3 = scmp.ne.s32.totalorder %s19_s13, %s570_s23  ;;  %p576_p5 = scmp.lt.s32.totalorder %s570_s23, %s570_s23 }
   0xc   :  { %p577_p6 = por %p576_p5, %p575_p4 }
   0xe   :  { %p578_p7 = pnand %p577_p6, %p571_p3 }
  0x10   :  { %581 = shalt.err (!%p578_p7)
}
  0x11   :  { %21 = dma.hbm_to_vmem [thread:$0]  %s708_s1, 256, %s19_s13, [#allocation3]  }
  0x12   :  { %s582_s28 = scalar_lea.hbm %s709_s2, 512 }
  0x13   :  { %p583_p8 = scmp.ne.s32.totalorder %s709_s2, %s582_s28  ;;  %p586_p9 = scmp.lt.u32.totalorder %s582_s28, %s709_s2 }
  0x15   :  { %p588_p10 = pnand %p586_p9, %p583_p8 }
  0x17   :  { %591 = shalt.err (!%p588_p10)
}
  0x18   :  { %s592_s6 = scalar_lea.vmem %s29_s15, 512  ;;  %p597_p12 = scmp.lt.s32.totalorder %s29_s15, %s29_s15 }
  0x19   :  { %p593_p11 = scmp.ne.s32.totalorder %s29_s15, %s592_s6  ;;  %p598_p13 = scmp.lt.s32.totalorder %s592_s6, %s592_s6 }
  0x1b   :  { %p599_p0 = por %p598_p13, %p597_p12 }
  0x1d   :  { %p600_p1 = pnand %p599_p0, %p593_p11 }
  0x1f   :  { %603 = shalt.err (!%p600_p1)
}
  0x20   :  { %31 = dma.hbm_to_vmem [thread:$0]  %s709_s2, 512, %s29_s15, [#allocation5]  }
  0x21   :  { %604 = dma.done.wait [#allocation3], 256  }
  0x22   :  { %605 = vsyncadd [#allocation3], 4294967040 }
  0x23   :  { %606 = dma.done.wait [#allocation5], 512  }
  0x24   :  { %607 = vsyncadd [#allocation5], 4294966784  ;;  %v610_v0 = vmov 0   ;;  %v611_v1 = vmov 0.0   ;;  %v46_v2 = vld [vmem:[%s707_s0] sm:$0x3]  ;;  %v51_v11 = vlaneseq }
  0x25   :  { %555 = vset.pattern.permute.xlu0 %v610_v0  ;;  %152 = vmatprep.mubr.f32.mxu0 %v611_v1  ;;  %v47_v3 = vld [vmem:[#allocation4] sm:$0xff]  ;;  %vm71_vm0 = vcmask 1043456   ;;  %v48_v4 = vld [vmem:[#allocation4 + $0x8] sm:$0xff]  ;;  %vm42_vm1 = vcmask 31744   ;;  %v49_v7 = vld [vmem:[#allocation4 + $0x10] sm:$0xff]  ;;  %vm497_vm3 = vcmask 1041408  }
  0x26   :  { %223 = vmatprep.mubr.f32.mxu1 %v611_v1  ;;  %54 = vperm.xlu0 %555, %v46_v2   ;;  %v63_v5 = vcombine.high %v47_v3, %v47_v3  ;;  %v64_v6 = vcombine.high %v48_v4, %v48_v4  ;;  %v50_v8 = vld [vmem:[#allocation4 + $0x18] sm:$0xff]  ;;  %43 = vst.msk [vmem:[%s710_s3] sm:$0xff] %vm42_vm1, %v611_v1  ;;  %v670_v12 = vand.u32 127, %v51_v11  ;;  %v612_v15 = vmov 1983009808   ;;  %v44_v30 = vld [vmem:[#allocation2] sm:$0xff] }
  0x27   :  { %v65_v9 = vcombine.high %v49_v7, %v49_v7  ;;  %v66_v10 = vcombine.high %v50_v8, %v50_v8  ;;  %v383_v16 = vunpack.c.l.s4 %v612_v15  ;;  %v685_v18 = vshrl.u32 %v51_v11, 7  ;;  %v45_v39 = vld [vmem:[#allocation2 + $0x8] sm:$0xff] }
  0x28   :  { %538 = vmatprep.subr.msk.mxu0 %vm71_vm0, %v63_v5  ;;  %541 = vmatprep.subr.msk.mxu1 %vm71_vm0, %v64_v6  ;;  %vm516_vm4 = vcmask 25600  }
  0x29   :  { %539 = vmatpush1.msk.msra.mxu0 %vm71_vm0, %v47_v3  ;;  %542 = vmatpush1.msk.msra.mxu1 %vm71_vm0, %v48_v4  ;;  %v384_v17 = vunpack.c.0.s8 %v383_v16  ;;  %vm527_vm5 = vcmp.eq.s32.totalorder %v685_v18, 0 }
  0x2a   :  { %544 = vmatprep.subr.msk.mxu0 %vm71_vm0, %v65_v9  ;;  %547 = vmatprep.subr.msk.mxu1 %vm71_vm0, %v66_v10 }
  0x2b   :  { %v387_v19 = vsub.s32 %v384_v17, %v685_v18 }
  0x2d   :  { %v526_v16 = vld [vmem:[%s710_s3] sm:$0xff] }
  0xa5   :  { %v672_v13 = vpop.permute.xlu0 %54 }
  0xa6   :  { %vm56_vm2 = vcmp.eq.s32.totalorder %v670_v12, %v672_v13 }
  0xa7   :  { %v537_v14 = vsel %vm56_vm2, 1.0, %v611_v1 }
  0xa8   :  { %540 = vmatmul.mubr.msk.f32.vlgmr.msra.gmra.mrb[0].mxu0 %vm42_vm1, %v537_v14  ;;  %543 = vmatmul.mubr.msk.f32.vlgmr.msra.gmra.mrb[0].mxu1 %vm42_vm1, %v537_v14 }
  0xa9   :  { %545 = vmatpush1.msk.msra.mxu0 %vm71_vm0, %v49_v7  ;;  %294 = vmatprep.mubr.f32.mxu0 %v611_v1 }
  0xaa   :  { %548 = vmatpush1.msk.msra.mxu1 %vm71_vm0, %v50_v8  ;;  %365 = vmatprep.mubr.f32.mxu1 %v611_v1 }
  0xac   :  { %546 = vmatmul.mubr.msk.f32.vlgmr.msra.gmra.mrb[2].mxu0 %vm42_vm1, %v537_v14  ;;  %549 = vmatmul.mubr.msk.f32.vlgmr.msra.gmra.mrb[2].mxu1 %vm42_vm1, %v537_v14 }
 0x17b   :  { %v154_v20 = vpop.f32.mrb[0].mxu0  ;;  %v225_v21 = vpop.f32.mrb[0].mxu1 }
 0x17c   :  { %v156_v22 = vpop.f32.mrb[1].mxu0  ;;  %v227_v23 = vpop.f32.mrb[1].mxu1 }
 0x17d   :  { %v380_v24 = vcombine.low %v154_v20, %v156_v22  ;;  %v381_v25 = vcombine.low %v225_v21, %v227_v23 }
 0x17f   :  { %v388_v26 = vrot.slane %v380_v24, %v387_v19  ;;  %v395_v27 = vrot.slane %v381_v25, %v387_v19  ;;  %v296_v28 = vpop.f32.mrb[2].mxu0  ;;  %v367_v29 = vpop.f32.mrb[2].mxu1 }
 0x180   :  { %v298_v31 = vpop.f32.mrb[3].mxu0  ;;  %v369_v32 = vpop.f32.mrb[3].mxu1 }
 0x181   :  { %v396_v33 = vcombine.low %v388_v26, %v395_v27  ;;  %v397_v34 = vcombine.low %v296_v28, %v298_v31  ;;  %v398_v35 = vcombine.low %v367_v29, %v369_v32 }
 0x183   :  { %v416_v36 = vsub.f32 %v44_v30, %v396_v33  ;;  %v405_v37 = vrot.slane %v397_v34, %v387_v19  ;;  %v412_v38 = vrot.slane %v398_v35, %v387_v19 }
 0x185   :  { %v443_v40 = vmul.f32 %v416_v36, %v416_v36  ;;  %v413_v41 = vcombine.low %v405_v37, %v412_v38 }
 0x187   :  { %v447_v42 = vcombine.high %v443_v40, %v443_v40  ;;  %v454_v43 = vrot.slane %v443_v40, %v387_v19  ;;  %v417_v44 = vsub.f32 %v45_v39, %v413_v41 }
 0x189   :  { %v461_v45 = vrot.slane %v447_v42, %v387_v19  ;;  %v462_v46 = vcombine.high %v454_v43, %v454_v43  ;;  %v444_v47 = vmul.f32 %v417_v44, %v417_v44  ;;  %v498_v48 = vsel %vm497_vm3, %v454_v43, 0.0 }
 0x18b   :  { %v499_v49 = vsel %vm497_vm3, %v462_v46, 0.0  ;;  %v471_v50 = vrot.slane %v444_v47, %v387_v19  ;;  %v463_v51 = vcombine.high %v461_v45, %v461_v45  ;;  %v464_v52 = vcombine.high %v444_v47, %v444_v47 }
 0x18c   :  { %v500_v53 = vadd.f32 %v499_v49, %v498_v48  ;;  %v501_v55 = vsel %vm497_vm3, %v461_v45, 0.0 }
 0x18d   :  { %v478_v54 = vrot.slane %v464_v52, %v387_v19  ;;  %v479_v57 = vcombine.high %v471_v50, %v471_v50  ;;  %v503_v58 = vsel %vm497_vm3, %v463_v51, 0.0  ;;  %v505_v60 = vsel %vm497_vm3, %v471_v50, 0.0 }
 0x18e   :  { %v502_v56 = vadd.f32 %v501_v55, %v500_v53 }
 0x18f   :  { %v480_v62 = vcombine.high %v478_v54, %v478_v54  ;;  %v507_v63 = vsel %vm497_vm3, %v479_v57, 0.0  ;;  %v509_v1 = vsel %vm497_vm3, %v478_v54, 0.0 }
 0x190   :  { %v504_v59 = vadd.f32 %v503_v58, %v502_v56 }
 0x191   :  { %v511_v3 = vsel %vm497_vm3, %v480_v62, 0.0 }
 0x192   :  { %v506_v61 = vadd.f32 %v505_v60, %v504_v59 }
 0x194   :  { %v508_v0 = vadd.f32 %v507_v63, %v506_v61 }
 0x196   :  { %v510_v2 = vadd.f32 %v509_v1, %v508_v0 }
 0x198   :  { %v512_v4 = vadd.f32 %v511_v3, %v510_v2 }
 0x19a   :  { %513 = vadd.xlane.f32.xlu0 %v512_v4 }
 0x227   :  { %v514_v5 = vpop.xlane.xlu0 %513 }
 0x228   :  { %v515_v6 = vsel %vm56_vm2, %v514_v5, 0.0 }
 0x229   :  { %v517_v7 = vsel %vm516_vm4, %v515_v6, 0.0 }
 0x22a   :  { %v518_v8 = vrot.slane %v517_v7, 4 }
 0x22c   :  { %v519_v9 = vadd.f32 %v518_v8, %v517_v7 }
 0x22e   :  { %v520_v10 = vrot.slane %v519_v9, 2 }
 0x230   :  { %v521_v11 = vadd.f32 %v520_v10, %v519_v9 }
 0x232   :  { %v522_v14 = vrot.slane %v521_v11, 1 }
 0x234   :  { %v523_v15 = vadd.f32 %v522_v14, %v521_v11 }
 0x236   :  { %v528_v17 = vsel %vm527_vm5, %v523_v15, 0.0 }
 0x237   :  { %v529_v19 = vadd.f32 %v528_v17, %v526_v16 }
 0x239   :  { %530 = vst.msk [vmem:[%s710_s3] sm:$0xff] %vm42_vm1, %v529_v19 }
 0x23a   :  { %535 = vsyncpa [#allocation3], 1 }
 0x23b   :  { %536 = vsyncpa [#allocation5], 1 }

</bundles_post_ra>
